<compile_context>
chip_gen: v6e
topology: v6e:2x2x1
jax: 0.10.0
libtpu: 0.0.40
codegen_flags: <defaults>
</compile_context>

<pallas_src>
import jax
import jax.numpy as jnp
from jax.experimental import pallas as pl
from jax.experimental.pallas import tpu as pltpu

INPUT_SIZE = 1
FIRST_HIDDEN = 50
SECOND_HIDDEN = 30
ACTION_SPACE = 500

# Lane/sublane padded sizes (vreg = 8 sublanes x 128 lanes).
H1P = 128       # first_hidden  50  -> 128 lanes
H2P = 128       # second_hidden 30  -> 128 lanes (contraction dim for fc3)
OUTP = 512      # action_space  500 -> 512 lanes

# Live-row counts (8-sublane aligned) actually stored in HBM.
_W2_ROWS = 56   # 50 -> 56
_W3_ROWS = 32   # 30 -> 32

# Packed buffer A: shape (_PA_ROWS, 128), 8-row-aligned blocks.
_W1_ROW = 0                      # w1  (1, 128)
_B1_ROW = 8                      # b1  (1, 128)
_B2_ROW = 16                     # b2  (1, 128)
_W2_ROW = 24                     # w2  (56, 128)
_PA_ROWS = _W2_ROW + _W2_ROWS    # 80   (40 KiB)

# Packed buffer B: shape (_PB_ROWS, 512).
_W3_ROW = 0                      # w3  (32, 512)
_B3_ROW = _W3_ROWS               # b3  (1, 512)  -> row 32
_PB_ROWS = _B3_ROW + 8           # 40   (80 KiB)

# Max batch-tile per grid step (well under the 16/32/32 MiB scoped-VMEM defaults:
# out tile 512x512x4 = 1 MiB, x2 for double buffering, + ~0.5 MiB params/temps).
_MAX_TB = 512


def mlp_kernel(x_ref, pa_ref, pb_ref, out_ref):
    x = x_ref[...]                                       # (TB, 1)

    # Static, 8-aligned sub-views of the packed parameter buffers (no DMAs).
    w1 = pa_ref[_W1_ROW:_W1_ROW + 1, :]                  # (1, 128)
    b1 = pa_ref[_B1_ROW:_B1_ROW + 1, :]                  # (1, 128)
    b2 = pa_ref[_B2_ROW:_B2_ROW + 1, :]                  # (1, 128)
    w2s = pa_ref[_W2_ROW:_W2_ROW + _W2_ROWS, :]          # (56, 128)
    w3s = pb_ref[_W3_ROW:_W3_ROW + _W3_ROWS, :]          # (32, 512)
    b3 = pb_ref[_B3_ROW:_B3_ROW + 1, :]                  # (1, 512)

    # fc1: K == 1 -> skip the MXU, pure VPU broadcast multiply-add.
    # dropout(p=0) == identity, then ReLU.  Padded lanes 50..127 stay 0.
    h1 = jnp.maximum(x * w1 + b1, 0.0)                   # (TB, 128)

    # Zero-extend the trimmed weights back to K=128 in VMEM.  Cheap (a few
    # dozen vreg stores), keeps both matmuls full-K / layout-native instead of
    # narrow-K or lane-sliced, and means the zero rows never touch HBM.
    w2 = jnp.concatenate(
        [w2s, jnp.zeros((H1P - _W2_ROWS, H1P), jnp.float32)], axis=0)   # (128, 128)
    w3 = jnp.concatenate(
        [w3s, jnp.zeros((H2P - _W3_ROWS, OUTP), jnp.float32)], axis=0)  # (128, 512)

    # fc2 (MXU) + ReLU.  Padded h1 lanes are 0 and padded w2 rows/cols are 0,
    # so padding contributes nothing.  h2 lanes 30..127 stay exactly 0.
    h2 = jnp.maximum(
        jnp.dot(h1, w2, preferred_element_type=jnp.float32) + b2, 0.0)  # (TB, 128)

    # out layer (MXU), lane-dense 512-wide unmasked store.
    # Output lanes 500..511 are exactly 0 (zero w3 cols + zero b3 pad).
    out_ref[...] = (
        jnp.dot(h2, w3, preferred_element_type=jnp.float32) + b3)       # (TB, 512)


def pack_params(params):
    """Pack (w1,b1,w2,b2,w3,b3) into two lane-dense f32 buffers (zero padded,
    only live rows stored).  Weights are stored pre-transposed as (in, out) so
    the kernel computes y = x @ W + b (== PyTorch's x @ W.T + b, W:(out,in))."""
    w1, b1, w2, b2, w3, b3 = params
    pa = jnp.zeros((_PA_ROWS, H1P), jnp.float32)
    pa = pa.at[_W1_ROW, :FIRST_HIDDEN].set(w1[0])
    pa = pa.at[_B1_ROW, :FIRST_HIDDEN].set(b1)
    pa = pa.at[_B2_ROW, :SECOND_HIDDEN].set(b2)
    pa = pa.at[_W2_ROW:_W2_ROW + FIRST_HIDDEN, :SECOND_HIDDEN].set(w2)

    pb = jnp.zeros((_PB_ROWS, OUTP), jnp.float32)
    pb = pb.at[_W3_ROW:_W3_ROW + SECOND_HIDDEN, :ACTION_SPACE].set(w3)
    pb = pb.at[_B3_ROW, :ACTION_SPACE].set(b3)
    return pa, pb


def _forward_padded(x, pa, pb):
    """x: (B, 1) f32 -> (B, OUTP) f32 with lanes 500..511 == 0."""
    B = x.shape[0]
    tb = B if B <= _MAX_TB else _MAX_TB
    grid = (pl.cdiv(B, tb),)
    return pl.pallas_call(
        mlp_kernel,
        out_shape=jax.ShapeDtypeStruct((B, OUTP), jnp.float32),
        grid=grid,
        in_specs=[
            pl.BlockSpec((tb, INPUT_SIZE), lambda i: (i, 0)),
            # Constant index_maps: params fetched once, VMEM-resident across steps.
            pl.BlockSpec((_PA_ROWS, H1P), lambda i: (0, 0)),
            pl.BlockSpec((_PB_ROWS, OUTP), lambda i: (0, 0)),
        ],
        out_specs=pl.BlockSpec((tb, OUTP), lambda i: (i, 0)),
        compiler_params=pltpu.CompilerParams(
            dimension_semantics=("parallel",)),
    )(x, pa, pb)


@jax.jit
def net_forward_padded(x, pa, pb):
    """(B, 1) -> (B, 512).  Lanes 500..511 are exactly 0 — mask them if you
    consume this directly (e.g. don't argmax an all-negative Q row)."""
    return _forward_padded(x, pa, pb)


@jax.jit
def net_forward(x, pa, pb):
    """(B, 1) -> (B, ACTION_SPACE).  Matches the PyTorch module's forward.
    The de-pad slice is fused into the same jit -> no extra dispatch."""
    return _forward_padded(x, pa, pb)[:, :ACTION_SPACE]


def init_params(key):
    """kaiming_normal_ weights (matches module.initialize()); PyTorch-default
    uniform bias init (initialize() does not touch biases)."""
    k1, k2, k3, kb1, kb2, kb3 = jax.random.split(key, 6)

    def kaiming(k, fan_in, fan_out):
        std = (2.0 / fan_in) ** 0.5
        return jax.random.normal(k, (fan_in, fan_out), jnp.float32) * std

    def bias(k, fan_in, fan_out):
        bound = 1.0 / (fan_in ** 0.5)
        return jax.random.uniform(k, (fan_out,), jnp.float32, -bound, bound)

    w1 = kaiming(k1, INPUT_SIZE, FIRST_HIDDEN)
    b1 = bias(kb1, INPUT_SIZE, FIRST_HIDDEN)
    w2 = kaiming(k2, FIRST_HIDDEN, SECOND_HIDDEN)
    b2 = bias(kb2, FIRST_HIDDEN, SECOND_HIDDEN)
    w3 = kaiming(k3, SECOND_HIDDEN, ACTION_SPACE)
    b3 = bias(kb3, SECOND_HIDDEN, ACTION_SPACE)
    return (w1, b1, w2, b2, w3, b3)


def reference_forward(x, params):
    """Pure-JAX reference of the PyTorch forward (unpadded params)."""
    w1, b1, w2, b2, w3, b3 = params
    h1 = jnp.maximum(x @ w1 + b1, 0.0)
    h2 = jnp.maximum(h1 @ w2 + b2, 0.0)
    return h2 @ w3 + b3


if __name__ == "__main__":
    key = jax.random.PRNGKey(0)
    kx, kp, kx2 = jax.random.split(key, 3)

    params = init_params(kp)
    pa, pb = pack_params(params)   # pack once; reuse across calls in RL loop

    # Small batch, single grid step.
    batch = 8
    x = jax.random.normal(kx, (batch, INPUT_SIZE), jnp.float32)
    out = jax.block_until_ready(net_forward(x, pa, pb))
    ref = reference_forward(x, params)
    assert out.shape == (batch, ACTION_SPACE), out.shape
    assert jnp.allclose(out, ref, atol=1e-4, rtol=1e-4), "mismatch vs reference (B=8)"

    # Larger batch: exercises the batch grid (grid=(2,), TB=512, resident params).
    big = 1024
    xb = jax.random.normal(kx2, (big, INPUT_SIZE), jnp.float32)
    outb = jax.block_until_ready(net_forward(xb, pa, pb))
    refb = reference_forward(xb, params)
    assert outb.shape == (big, ACTION_SPACE), outb.shape
    assert jnp.allclose(outb, refb, atol=1e-4, rtol=1e-4), "mismatch vs reference (B=1024)"

    # Padded variant: no de-pad slice; padded lanes are exactly zero.
    outp = jax.block_until_ready(net_forward_padded(x, pa, pb))
    assert outp.shape == (batch, OUTP), outp.shape
    assert jnp.allclose(outp[:, :ACTION_SPACE], ref, atol=1e-4, rtol=1e-4)
    assert jnp.allclose(outp[:, ACTION_SPACE:], 0.0)

    print("KERNEL_OK")
</pallas_src>

<mosaic_0001>
module attributes {stable_mosaic.version = 11 : i64} {
  func.func @mlp_kernel(%arg0: i32, %arg1: memref<8x1xf32, #tpu.memory_space<vmem>>, %arg2: memref<80x128xf32, #tpu.memory_space<vmem>>, %arg3: memref<40x512xf32, #tpu.memory_space<vmem>>, %arg4: memref<8x512xf32, #tpu.memory_space<vmem>>) attributes {dimension_semantics = [#tpu.dimension_semantics<parallel>], iteration_bounds = array<i64: 1>, scalar_prefetch = 0 : i64, scratch_operands = 0 : i64, tpu.core_type = #tpu.core_type<tc>, window_params = [{transform_indices = @transform_0, window_bounds = array<i64: 8, 1>}, {pipeline_mode = #tpu.pipeline_mode<synchronous>, transform_indices = @transform_1, window_bounds = array<i64: 80, 128>}, {pipeline_mode = #tpu.pipeline_mode<synchronous>, transform_indices = @transform_2, window_bounds = array<i64: 40, 512>}, {transform_indices = @transform_3, window_bounds = array<i64: 8, 512>}]} {
    %c0 = arith.constant 0 : index
    %c0_0 = arith.constant 0 : index
    %0 = vector.load %arg1[%c0, %c0_0] : memref<8x1xf32, #tpu.memory_space<vmem>>, vector<8x1xf32>
    %c0_1 = arith.constant 0 : index
    %c0_2 = arith.constant 0 : index
    %1 = vector.load %arg2[%c0_1, %c0_2] : memref<80x128xf32, #tpu.memory_space<vmem>>, vector<1x128xf32>
    %c8 = arith.constant 8 : index
    %c0_3 = arith.constant 0 : index
    %2 = vector.load %arg2[%c8, %c0_3] : memref<80x128xf32, #tpu.memory_space<vmem>>, vector<1x128xf32>
    %c16 = arith.constant 16 : index
    %c0_4 = arith.constant 0 : index
    %3 = vector.load %arg2[%c16, %c0_4] : memref<80x128xf32, #tpu.memory_space<vmem>>, vector<1x128xf32>
    %c24 = arith.constant 24 : index
    %c0_5 = arith.constant 0 : index
    %4 = vector.load %arg2[%c24, %c0_5] : memref<80x128xf32, #tpu.memory_space<vmem>>, vector<56x128xf32>
    %c0_6 = arith.constant 0 : index
    %c0_7 = arith.constant 0 : index
    %5 = vector.load %arg3[%c0_6, %c0_7] : memref<40x512xf32, #tpu.memory_space<vmem>>, vector<32x512xf32>
    %c32 = arith.constant 32 : index
    %c0_8 = arith.constant 0 : index
    %6 = vector.load %arg3[%c32, %c0_8] : memref<40x512xf32, #tpu.memory_space<vmem>>, vector<1x512xf32>
    %7 = vector.broadcast %0 : vector<8x1xf32> to vector<8x128xf32>
    %8 = vector.broadcast %1 : vector<1x128xf32> to vector<8x128xf32>
    %9 = arith.mulf %7, %8 : vector<8x128xf32>
    %10 = vector.broadcast %2 : vector<1x128xf32> to vector<8x128xf32>
    %11 = arith.addf %9, %10 : vector<8x128xf32>
    %cst = arith.constant 0.000000e+00 : f32
    %12 = vector.broadcast %cst : f32 to vector<8x128xf32>
    %13 = arith.maximumf %11, %12 : vector<8x128xf32>
    %cst_9 = arith.constant 0.000000e+00 : f32
    %14 = vector.broadcast %cst_9 : f32 to vector<72x128xf32>
    %15 = tpu.concatenate %4, %14 in 0 : vector<56x128xf32>, vector<72x128xf32> -> vector<128x128xf32>
    %cst_10 = arith.constant 0.000000e+00 : f32
    %16 = vector.broadcast %cst_10 : f32 to vector<96x512xf32>
    %17 = tpu.concatenate %5, %16 in 0 : vector<32x512xf32>, vector<96x512xf32> -> vector<128x512xf32>
    %cst_11 = arith.constant dense<0.000000e+00> : vector<8x128xf32>
    %18 = tpu.matmul %13, %15, %cst_11 {dimension_numbers = #tpu.dot_dimension_numbers<[1], [0], [0], [1], [0, 0, 1, 1], [], []>} : vector<8x128xf32>, vector<128x128xf32>, vector<8x128xf32> -> vector<8x128xf32>
    %19 = vector.broadcast %3 : vector<1x128xf32> to vector<8x128xf32>
    %20 = arith.addf %18, %19 : vector<8x128xf32>
    %cst_12 = arith.constant 0.000000e+00 : f32
    %21 = vector.broadcast %cst_12 : f32 to vector<8x128xf32>
    %22 = arith.maximumf %20, %21 : vector<8x128xf32>
    %cst_13 = arith.constant dense<0.000000e+00> : vector<8x512xf32>
    %23 = tpu.matmul %22, %17, %cst_13 {dimension_numbers = #tpu.dot_dimension_numbers<[1], [0], [0], [1], [0, 0, 1, 1], [], []>} : vector<8x128xf32>, vector<128x512xf32>, vector<8x512xf32> -> vector<8x512xf32>
    %24 = vector.broadcast %6 : vector<1x512xf32> to vector<8x512xf32>
    %25 = arith.addf %23, %24 : vector<8x512xf32>
    %c0_14 = arith.constant 0 : index
    %c0_15 = arith.constant 0 : index
    %26 = vector.load %arg4[%c0_14, %c0_15] : memref<8x512xf32, #tpu.memory_space<vmem>>, vector<8x512xf32>
    tpu.vector_store %arg4[%c0_14, %c0_15], %25 {strides = array<i32>} : memref<8x512xf32, #tpu.memory_space<vmem>>, vector<8x512xf32>,
    return
  }
  func.func @transform_0(%arg0: i32) -> (i32, i32) {
    %c0_i32 = arith.constant 0 : i32
    %c0_i32_0 = arith.constant 0 : i32
    return %arg0, %c0_i32 : i32, i32
  }
  func.func @transform_1(%arg0: i32) -> (i32, i32) {
    %c0_i32 = arith.constant 0 : i32
    %c0_i32_0 = arith.constant 0 : i32
    %c0_i32_1 = arith.constant 0 : i32
    return %c0_i32, %c0_i32_0 : i32, i32
  }
  func.func @transform_2(%arg0: i32) -> (i32, i32) {
    %c0_i32 = arith.constant 0 : i32
    %c0_i32_0 = arith.constant 0 : i32
    %c0_i32_1 = arith.constant 0 : i32
    return %c0_i32, %c0_i32_0 : i32, i32
  }
  func.func @transform_3(%arg0: i32) -> (i32, i32) {
    %c0_i32 = arith.constant 0 : i32
    %c0_i32_0 = arith.constant 0 : i32
    return %arg0, %c0_i32 : i32, i32
  }
}

</mosaic_0001>

<bundles_post_ra>
// kernel: net_forward.1
= control target key start
LH: loop header
LB: loop body
LE: loop exit
PB: predicated region body
PF: predicated region fallthrough
CT: control target
= control target key end

     0   :  { %8 = vsyncpa [#allocation3], 0  ;;  %s493_s0 = inlined_call_operand.vmem [shape: f32[8,1], index: 0, kind: input, shape index: {}]   ;;  %s494_s1 = inlined_call_operand.hbm [shape: f32[80,128], index: 1, kind: input, shape index: {}]   ;;  %s495_s2 = inlined_call_operand.hbm [shape: f32[40,512], index: 2, kind: input, shape index: {}]   ;;  %s496_s3 = inlined_call_operand.hbm [shape: f32[8,512], index: 3, kind: output, shape index: {}]  }
   0x1   :  { %9 = vsyncpa [#allocation6], 0 }
   0x2   :  { %10 = vsyncpa [#allocation4], 0  ;;  %s451_s12 = smov [#allocation2]  }
   0x3   :  { %s18_s13 = sshll.u32 %s451_s12, 4  ;;  %s19_s13 = int_to_ptr.vmem [resolvable:$true] %s18_s13 }
   0x4   :  { %s393_s14 = scalar_lea.vmem %s19_s13, 1280  ;;  %p398_p1 = scmp.lt.s32.totalorder %s19_s13, %s19_s13 }
   0x5   :  { %p394_p0 = scmp.ne.s32.totalorder %s19_s13, %s393_s14  ;;  %p399_p2 = scmp.lt.s32.totalorder %s393_s14, %s393_s14 }
   0x7   :  { %p400_p3 = por %p399_p2, %p398_p1 }
   0x9   :  { %p401_p4 = pnand %p400_p3, %p394_p0 }
   0xb   :  { %404 = shalt.err (!%p401_p4)
}
   0xc   :  { %s452_s15 = smov 128   ;;  %s453_s16 = smov 8  }
   0xd   :  { %24 = dma.hbm_to_vmem [thread:$0]  %s494_s1, 1280, %s19_s13, [#allocation3], %s452_s15, %s452_s15, %s453_s16  }
   0xe   :  { %s454_s19 = smov [#allocation5]  }
   0xf   :  { %s30_s20 = sshll.u32 %s454_s19, 4  ;;  %s31_s20 = int_to_ptr.vmem [resolvable:$true] %s30_s20 }
  0x10   :  { %s413_s21 = scalar_lea.vmem %s31_s20, 2560  ;;  %p418_p6 = scmp.lt.s32.totalorder %s31_s20, %s31_s20 }
  0x11   :  { %p414_p5 = scmp.ne.s32.totalorder %s31_s20, %s413_s21  ;;  %p419_p7 = scmp.lt.s32.totalorder %s413_s21, %s413_s21 }
  0x13   :  { %p420_p8 = por %p419_p7, %p418_p6 }
  0x15   :  { %p421_p9 = pnand %p420_p8, %p414_p5 }
  0x17   :  { %424 = shalt.err (!%p421_p9)
}
  0x18   :  { %s455_s22 = smov 512   ;;  %s456_s23 = smov 32  }
  0x19   :  { %36 = dma.hbm_to_vmem [thread:$0]  %s495_s2, 2560, %s31_s20, [#allocation6], %s455_s22, %s455_s22, %s456_s23  }
  0x1a   :  { %445 = dma.done.wait [#allocation3], 1280  }
  0x1b   :  { %446 = vsyncadd [#allocation3], 4294966016 }
  0x1c   :  { %447 = dma.done.wait [#allocation6], 2560  }
  0x1d   :  { %448 = vsyncadd [#allocation6], 4294964736  ;;  %v457_v0 = vmov 0   ;;  %v458_v1 = vmov 0.0   ;;  %v43_v2 = vld [vmem:[%s493_s0] sm:$0xff]  ;;  %v53_v3 = vld [vmem:[#allocation2 + $0x48] sm:$0xff]  ;;  %v164_v37 = vlaneseq }
  0x1e   :  { %384 = vset.pattern.permute.xlu0 %v457_v0  ;;  %357 = vmatprep.subr.mxu0 %v458_v1  ;;  %v52_v4 = vld [vmem:[#allocation2 + $0x40] sm:$0xff]  ;;  %v51_v5 = vld [vmem:[#allocation2 + $0x38] sm:$0xff]  ;;  %vm459_vm0 = vmmov 0   ;;  %v66_v7 = vld [vmem:[#allocation5 + $0x60] sm:$0xff]  ;;  %s460_s0 = smov [#allocation7]  }
  0x1f   :  { %248 = vmatprep.mubr.f32.mxu1 %v458_v1  ;;  %74 = vperm.xlu0 %384, %v43_v2   ;;  %v67_v6 = vld [vmem:[#allocation5 + $0x68] sm:$0xff]  ;;  %v50_v8 = vld [vmem:[#allocation2 + $0x30] sm:$0xff]  ;;  %v49_v11 = vld [vmem:[#allocation2 + $0x28] sm:$0xff]  ;;  %v165_v38 = vshrl.u32 %v164_v37, 7  ;;  %s336_s2 = sshll.u32 %s460_s0, 4  ;;  %s337_s2 = int_to_ptr.vmem [resolvable:$true] %s336_s2 }
  0x20   :  { %358 = vmatpush3.msra.mxu0 %v53_v3  ;;  %371 = vmatprep.mubr.msk.f32.mxu0 %vm459_vm0, %v458_v1  ;;  %v63_v9 = vld [vmem:[#allocation5 + $0x48] sm:$0xff]  ;;  %v62_v10 = vld [vmem:[#allocation5 + $0x40] sm:$0xff]  ;;  %v48_v12 = vld [vmem:[#allocation2 + $0x20] sm:$0xff]  ;;  %s425_s27 = scalar_lea.vmem %s337_s2, 512  ;;  %p430_p11 = scmp.lt.s32.totalorder %s337_s2, %s337_s2 }
  0x21   :  { %359 = vmatprep.subr.mxu0 %v458_v1  ;;  %208 = vmatprep.subr.mxu1 %v67_v6  ;;  %v47_v13 = vld [vmem:[#allocation2 + $0x18] sm:$0xff]  ;;  %v346_v14 = vld [vmem:[#allocation2] ss:$0 sm:$0xff]  ;;  %v347_v15 = vld [vmem:[#allocation2 + $0x8] ss:$0 sm:$0xff]  ;;  %v166_v39 = vsub.s32 0, %v165_v38  ;;  %p426_p10 = scmp.ne.s32.totalorder %s337_s2, %s425_s27  ;;  %p431_p12 = scmp.lt.s32.totalorder %s425_s27, %s425_s27 }
  0x22   :  { %360 = vmatpush3.msra.mxu0 %v52_v4  ;;  %209 = vmatpush1.msra.mxu1 %v66_v7  ;;  %v59_v20 = vld [vmem:[#allocation5 + $0x28] sm:$0xff]  ;;  %v58_v21 = vld [vmem:[#allocation5 + $0x20] sm:$0xff]  ;;  %v69_v24 = vld [vmem:[#allocation5 + $0x78] sm:$0xff]  ;;  %v170_v41 = vsub.s32 1, %v165_v38  ;;  %v174_v46 = vsub.s32 2, %v165_v38  ;;  %v178_v49 = vsub.s32 3, %v165_v38 }
  0x23   :  { %361 = vmatprep.subr.mxu0 %v458_v1  ;;  %210 = vmatprep.subr.mxu1 %v63_v9  ;;  %v55_v22 = vld [vmem:[#allocation5 + $0x8] sm:$0xff]  ;;  %v54_v23 = vld [vmem:[#allocation5] sm:$0xff]  ;;  %v68_v30 = vld [vmem:[#allocation5 + $0x70] sm:$0xff]  ;;  %p432_p13 = por %p431_p12, %p430_p11 }
  0x24   :  { %362 = vmatpush3.msra.mxu0 %v51_v5  ;;  %211 = vmatpush1.msra.mxu1 %v62_v10  ;;  %v348_v25 = vld [vmem:[#allocation2 + $0x10] ss:$0 sm:$0xff]  ;;  %v65_v31 = vld [vmem:[#allocation5 + $0x58] sm:$0xff]  ;;  %v64_v32 = vld [vmem:[#allocation5 + $0x50] sm:$0xff] }
  0x25   :  { %363 = vmatprep.subr.mxu0 %v458_v1  ;;  %212 = vmatprep.subr.mxu1 %v59_v20  ;;  %v61_v33 = vld [vmem:[#allocation5 + $0x38] sm:$0xff]  ;;  %v60_v34 = vld [vmem:[#allocation5 + $0x30] sm:$0xff]  ;;  %p433_p0 = pnand %p432_p13, %p426_p10 }
  0x26   :  { %364 = vmatpush3.msra.mxu0 %v50_v8  ;;  %213 = vmatpush1.msra.mxu1 %v58_v21  ;;  %v57_v35 = vld [vmem:[#allocation5 + $0x18] sm:$0xff]  ;;  %v56_v36 = vld [vmem:[#allocation5 + $0x10] sm:$0xff] }
  0x27   :  { %365 = vmatprep.subr.mxu0 %v458_v1  ;;  %214 = vmatprep.subr.mxu1 %v55_v22  ;;  %v71_v40 = vld [vmem:[#allocation5 + $0x80] ss:$8 sm:$0xf] }
  0x28   :  { %366 = vmatpush3.msra.mxu0 %v49_v11  ;;  %215 = vmatpush1.msra.mxu1 %v54_v23  ;;  %v167_v42 = vrot.slane %v71_v40, %v166_v39  ;;  %v171_v43 = vrot.slane %v71_v40, %v170_v41  ;;  %v175_v50 = vrot.slane %v71_v40, %v174_v46 }
  0x29   :  { %367 = vmatprep.subr.mxu0 %v458_v1  ;;  %279 = vmatprep.subr.mxu1 %v69_v24  ;;  %v179_v51 = vrot.slane %v71_v40, %v178_v49 }
  0x2a   :  { %368 = vmatpush3.msra.mxu0 %v48_v12 }
  0x2b   :  { %369 = vmatprep.subr.mxu0 %v458_v1 }
  0x2c   :  { %370 = vmatpush3.msra.mxu0 %v47_v13 }
  0x9a   :  { %v75_v16 = vpop.permute.xlu0 %74 }
  0x9b   :  { %v81_v17 = vmul.f32 %v346_v14, %v75_v16 }
  0x9d   :  { %v86_v18 = vadd.f32 %v347_v15, %v81_v17 }
  0x9f   :  { %v87_v19 = vmax.f32 %v86_v18, 0.0 }
  0xa1   :  { %372 = vmatmul.mubr.f32.vlgmr.msra.gmra.mxu0 %v87_v19 }
 0x161   :  { %v158_v26 = vpop.f32.mrf.mxu0 }
 0x162   :  { %v159_v27 = vadd.f32 %v348_v25, %v158_v26 }
 0x163   :  { %v373_v28 = vpop.f32.mrf.mxu0 }
 0x164   :  { %v162_v29 = vmax.f32 %v159_v27, 0.0 }
 0x166   :  { %249 = vmatmul.mubr.f32.vlgmr.msra.gmra.mxu1 %v162_v29 }
 0x167   :  { %280 = vmatpush1.msra.mxu1 %v68_v30  ;;  %319 = vmatprep.mubr.f32.mxu1 %v458_v1 }
 0x168   :  { %281 = vmatprep.subr.mxu1 %v65_v31 }
 0x169   :  { %282 = vmatpush1.msra.mxu1 %v64_v32 }
 0x16a   :  { %283 = vmatprep.subr.mxu1 %v61_v33 }
 0x16b   :  { %284 = vmatpush1.msra.mxu1 %v60_v34 }
 0x16c   :  { %285 = vmatprep.subr.mxu1 %v57_v35 }
 0x16d   :  { %286 = vmatpush1.msra.mxu1 %v56_v36 }
 0x16e   :  { %320 = vmatmul.mubr.f32.vlgmr.msra.gmra.mxu1 %v162_v29 }
 0x226   :  { %v250_v44 = vpop.f32.mrf.mxu1 }
 0x227   :  { %v251_v45 = vadd.f32 %v250_v44, %v167_v42 }
 0x228   :  { %v252_v47 = vpop.f32.mrf.mxu1 }
 0x229   :  { %326 = vst [vmem:[#allocation7] sm:$0xff] %v251_v45  ;;  %v253_v48 = vadd.f32 %v252_v47, %v171_v43 }
 0x22b   :  { %327 = vst [vmem:[#allocation7 + $0x8] sm:$0xff] %v253_v48 }
 0x22e   :  { %v321_v52 = vpop.f32.mrf.mxu1 }
 0x22f   :  { %v322_v53 = vadd.f32 %v321_v52, %v175_v50 }
 0x230   :  { %v323_v54 = vpop.f32.mrf.mxu1 }
 0x231   :  { %328 = vst [vmem:[#allocation7 + $0x10] sm:$0xff] %v322_v53  ;;  %v324_v55 = vadd.f32 %v323_v54, %v179_v51 }
 0x233   :  { %329 = vst [vmem:[#allocation7 + $0x18] sm:$0xff] %v324_v55 }
 0x234   :  { %436 = shalt.err (!%p433_p0)
}
 0x235   :  { %339 = dma.vmem_to_hbm [thread:$0]  %s337_s2, 512, %s496_s3, [#allocation4]  }
 0x236   :  { %449 = dma.done.wait [#allocation4], 512  }
 0x237   :  { %450 = vsyncadd [#allocation4], 4294966784 }
 0x238   :  { %343 = vsyncpa [#allocation3], 1 }
 0x239   :  { %344 = vsyncpa [#allocation6], 1 }
 0x23a   :  { %345 = vsyncpa [#allocation4], 1 }

</bundles_post_ra>
